<compile_context>
chip_gen: v5e
topology: v5e:2x2
jax: 0.10.0
libtpu: 0.0.40
codegen_flags: <defaults>
</compile_context>

<pallas_src>
import jax
import jax.numpy as jnp
from jax import lax
from jax.experimental import pallas as pl
from jax.experimental.pallas import tpu as pltpu


def _temporal_attn_kernel(x_ref, wt_ref, b_ref, mask_ref, o_ref):
    # x_ref   : (Bb, T, N, D)   input block in the original [B, T, N, D] layout
    # wt_ref  : (D, D)          FC_v weight, pre-transposed (value = x @ wt + b)
    # b_ref   : (1, D)          FC_v bias
    # mask_ref: (T*N, T*N) f32  additive same-head mask: 0 (same head) / -1e30
    # o_ref   : (Bb, T, N, D)
    Bb, T, N, D = x_ref.shape
    scale = 1.0 / (D ** 0.5)

    # Precomputed additive mask: DMA'd once (constant block index), one VPU add
    # instead of iota/%/where per step.
    mask_bias = mask_ref[...]                      # (T*N, T*N) f32

    def one_batch(bi, carry):
        x2 = x_ref[bi].reshape(T * N, D)           # row r = t*N + n (layout no-op)

        # ---- scores for every head at once: one (T*N, T*N) MXU tile ---------
        s = lax.dot_general(x2, x2, (((1,), (1,)), ((), ())),
                            preferred_element_type=jnp.float32)
        s = s * scale + mask_bias                  # cross-head logits -> -1e30

        # ---- softmax over the masked row, f32 throughout ---------------------
        s = s - jnp.max(s, axis=-1, keepdims=True)
        p = jnp.exp(s)                             # masked entries -> exactly 0
        l = jnp.sum(p, axis=-1, keepdims=True)     # (T*N, 1) row normalizer

        # ---- value projection (deferred here to shorten v2's live range) -----
        v2 = jnp.dot(x2, wt_ref[...], preferred_element_type=jnp.float32)
        v2 = v2 + b_ref[...].astype(jnp.float32)   # (T*N, D) f32

        # ---- out = (P @ V) / l --------------------------------------------------
        # Zero cross-head probabilities make this exactly the per-head
        # attention @ value.  MXU operands keep the input dtype (bf16 inputs ->
        # bf16 operands); accumulation stays f32.  Normalization is an exact f32
        # divide on the small (T*N, D) output (no approximate reciprocal).
        o2 = jnp.dot(p.astype(x_ref.dtype), v2.astype(x_ref.dtype),
                     preferred_element_type=jnp.float32)
        o2 = o2 / l
        o_ref[bi] = o2.reshape(T, N, D).astype(o_ref.dtype)
        return carry

    # Unrolled loop over the Bb batch elements in this block (Bb == 1 default).
    lax.fori_loop(0, Bb, one_batch, 0, unroll=True)


def temporal_attention(x, weight, bias, *, mask=True, block_b=1,
                       vmem_limit_bytes=None):
    """
    x:      [B, T, N, D]  (same axis convention as the PyTorch module)
    weight: [D, D]        (nn.Linear weight, out_features x in_features)
    bias:   [D]
    returns [B, T, N, D]

    NOTE / API flag: the reference PyTorch forward constructs a lower-triangular
    causal mask but never applies it; `mask=True` is accepted for parity only
    and has NO effect on the computation (mirroring the reference exactly).
    """
    B, T, N, D = x.shape
    # TODO(synk): if the upstream model is ever fixed to actually apply the
    # causal mask, fold it into `mask_bias` below (add -1e30 where t' > t).
    del mask

    # Batch blocking (for real workloads with B >> 2).  Keep >= 2 grid steps
    # when possible so v7x's two TensorCores both get work.
    if block_b is None or block_b < 1 or (B % block_b) != 0:
        block_b = 1
    while block_b > 1 and (B // block_b) < 2:
        block_b //= 2
        while block_b > 1 and (B % block_b) != 0:
            block_b -= 1
    grid = (B // block_b,)

    # Hoist the nn.Linear weight transpose out of the kernel (one-time cost).
    w_t = jnp.asarray(weight).T
    bias2d = jnp.asarray(bias).reshape(1, D)

    # Additive same-head mask, built once in the wrapper (not per grid step).
    head = jnp.arange(T * N, dtype=jnp.int32) % N
    mask_bias = jnp.where(head[:, None] == head[None, :],
                          jnp.float32(0.0), jnp.float32(-1e30))

    cp_kwargs = dict(dimension_semantics=("parallel",))
    if vmem_limit_bytes is not None:
        # Relevant once Bb / T*N grow: v5e scoped-VMEM default is 16 MiB,
        # v6e/v7x 32 MiB (v7x physical ceiling 64 MiB).
        cp_kwargs["vmem_limit_bytes"] = vmem_limit_bytes

    return pl.pallas_call(
        _temporal_attn_kernel,
        out_shape=jax.ShapeDtypeStruct((B, T, N, D), x.dtype),
        grid_spec=pltpu.PrefetchScalarGridSpec(
            num_scalar_prefetch=0,
            grid=grid,
            in_specs=[
                pl.BlockSpec((block_b, T, N, D), lambda b: (b, 0, 0, 0)),
                pl.BlockSpec((D, D), lambda b: (0, 0)),
                pl.BlockSpec((1, D), lambda b: (0, 0)),
                pl.BlockSpec((T * N, T * N), lambda b: (0, 0)),
            ],
            out_specs=pl.BlockSpec((block_b, T, N, D), lambda b: (b, 0, 0, 0)),
        ),
        compiler_params=pltpu.CompilerParams(**cp_kwargs),
    )(x, w_t, bias2d, mask_bias)


def _reference(x, weight, bias):
    """Pure-JAX reference mirroring the PyTorch forward exactly."""
    B, T, N, D = x.shape
    value = jnp.einsum("btnd,ed->btne", x, weight) + bias
    q = jnp.transpose(x, (0, 2, 1, 3))          # [B, N, T, D]
    k = jnp.transpose(x, (0, 2, 3, 1))          # [B, N, D, T]
    v = jnp.transpose(value, (0, 2, 1, 3))      # [B, N, T, D]
    attn = jnp.matmul(q, k) / (D ** 0.5)        # [B, N, T, T]
    attn = jax.nn.softmax(attn, axis=-1)
    out = jnp.matmul(attn, v)                   # [B, N, T, D]
    return jnp.transpose(out, (0, 2, 1, 3))     # [B, T, N, D]


if __name__ == "__main__":
    B, T, N, D = 2, 8, 16, 32   # batch, num_step, num_vertex, D

    key = jax.random.PRNGKey(0)
    kx, kw, kb = jax.random.split(key, 3)
    x = jax.random.normal(kx, (B, T, N, D), dtype=jnp.float32)
    bound = 1.0 / (D ** 0.5)
    weight = jax.random.uniform(kw, (D, D), minval=-bound, maxval=bound,
                                dtype=jnp.float32)
    bias = jax.random.uniform(kb, (D,), minval=-bound, maxval=bound,
                              dtype=jnp.float32)

    out = temporal_attention(x, weight, bias, mask=True)
    out = jax.block_until_ready(out)

    ref = jax.block_until_ready(_reference(x, weight, bias))
    assert out.shape == (B, T, N, D)
    # f32 math end-to-end with an exact softmax normalizer; tolerance only
    # covers matmul accumulation-order / default-precision differences.
    assert jnp.allclose(out, ref, atol=2e-3, rtol=2e-3), (
        float(jnp.max(jnp.abs(out - ref))))
    print("KERNEL_OK")
</pallas_src>

<mosaic_0001>
module attributes {stable_mosaic.version = 11 : i64} {
  func.func @_temporal_attn_kernel(%arg0: i32, %arg1: memref<1x8x16x32xf32, #tpu.memory_space<vmem>>, %arg2: memref<32x32xf32, #tpu.memory_space<vmem>>, %arg3: memref<1x32xf32, #tpu.memory_space<vmem>>, %arg4: memref<128x128xf32, #tpu.memory_space<vmem>>, %arg5: memref<1x8x16x32xf32, #tpu.memory_space<vmem>>) attributes {dimension_semantics = [#tpu.dimension_semantics<parallel>], iteration_bounds = array<i64: 2>, scalar_prefetch = 0 : i64, scratch_operands = 0 : i64, tpu.core_type = #tpu.core_type<tc>, window_params = [{transform_indices = @transform_0, window_bounds = array<i64: 1, 8, 16, 32>}, {pipeline_mode = #tpu.pipeline_mode<synchronous>, transform_indices = @transform_1, window_bounds = array<i64: 32, 32>}, {pipeline_mode = #tpu.pipeline_mode<synchronous>, transform_indices = @transform_2, window_bounds = array<i64: 1, 32>}, {pipeline_mode = #tpu.pipeline_mode<synchronous>, transform_indices = @transform_3, window_bounds = array<i64: 128, 128>}, {transform_indices = @transform_4, window_bounds = array<i64: 1, 8, 16, 32>}]} {
    %c0 = arith.constant 0 : index
    %c0_0 = arith.constant 0 : index
    %0 = vector.load %arg4[%c0, %c0_0] : memref<128x128xf32, #tpu.memory_space<vmem>>, vector<128x128xf32>
    %c0_i32 = arith.constant 0 : i32
    %1 = arith.index_cast %c0_i32 : i32 to index
    %c0_1 = arith.constant 0 : index
    %c0_2 = arith.constant 0 : index
    %c0_3 = arith.constant 0 : index
    %2 = vector.load %arg1[%1, %c0_1, %c0_2, %c0_3] : memref<1x8x16x32xf32, #tpu.memory_space<vmem>>, vector<1x8x16x32xf32>
    %3 = vector.shape_cast %2 : vector<1x8x16x32xf32> to vector<8x16x32xf32>
    %4 = vector.shape_cast %3 : vector<8x16x32xf32> to vector<128x32xf32>
    %cst = arith.constant dense<0.000000e+00> : vector<128x128xf32>
    %5 = tpu.matmul %4, %4, %cst {dimension_numbers = #tpu.dot_dimension_numbers<[1], [1], [0], [0], [0, 0, 1, 0], [], []>} : vector<128x32xf32>, vector<128x32xf32>, vector<128x128xf32> -> vector<128x128xf32>
    %cst_4 = arith.constant 0.176776692 : f32
    %6 = vector.broadcast %cst_4 : f32 to vector<128x128xf32>
    %7 = arith.mulf %5, %6 : vector<128x128xf32>
    %8 = arith.addf %7, %0 : vector<128x128xf32>
    %cst_5 = arith.constant dense<0xFF800000> : vector<128xf32>
    %9 = vector.multi_reduction <maximumf>, %8, %cst_5 [1] : vector<128x128xf32> to vector<128xf32>
    %10 = vector.shape_cast %9 : vector<128xf32> to vector<128x1xf32>
    %11 = vector.broadcast %10 : vector<128x1xf32> to vector<128x128xf32>
    %12 = arith.subf %8, %11 : vector<128x128xf32>
    %13 = math.exp %12 : vector<128x128xf32>
    %cst_6 = arith.constant dense<0.000000e+00> : vector<128xf32>
    %14 = vector.multi_reduction <add>, %13, %cst_6 [1] : vector<128x128xf32> to vector<128xf32>
    %15 = vector.shape_cast %14 : vector<128xf32> to vector<128x1xf32>
    %c0_7 = arith.constant 0 : index
    %c0_8 = arith.constant 0 : index
    %16 = vector.load %arg2[%c0_7, %c0_8] : memref<32x32xf32, #tpu.memory_space<vmem>>, vector<32x32xf32>
    %cst_9 = arith.constant dense<0.000000e+00> : vector<128x32xf32>
    %17 = tpu.matmul %4, %16, %cst_9 {dimension_numbers = #tpu.dot_dimension_numbers<[1], [0], [0], [1], [0, 0, 1, 1], [], []>} : vector<128x32xf32>, vector<32x32xf32>, vector<128x32xf32> -> vector<128x32xf32>
    %c0_10 = arith.constant 0 : index
    %c0_11 = arith.constant 0 : index
    %18 = vector.load %arg3[%c0_10, %c0_11] : memref<1x32xf32, #tpu.memory_space<vmem>>, vector<1x32xf32>
    %19 = vector.broadcast %18 : vector<1x32xf32> to vector<128x32xf32>
    %20 = arith.addf %17, %19 : vector<128x32xf32>
    %cst_12 = arith.constant dense<0.000000e+00> : vector<128x32xf32>
    %21 = tpu.matmul %13, %20, %cst_12 {dimension_numbers = #tpu.dot_dimension_numbers<[1], [0], [0], [1], [0, 0, 1, 1], [], []>} : vector<128x128xf32>, vector<128x32xf32>, vector<128x32xf32> -> vector<128x32xf32>
    %22 = vector.broadcast %15 : vector<128x1xf32> to vector<128x32xf32>
    %23 = arith.divf %21, %22 : vector<128x32xf32>
    %24 = vector.shape_cast %23 : vector<128x32xf32> to vector<8x16x32xf32>
    %25 = arith.index_cast %c0_i32 : i32 to index
    %c0_13 = arith.constant 0 : index
    %c0_14 = arith.constant 0 : index
    %c0_15 = arith.constant 0 : index
    %26 = vector.load %arg5[%25, %c0_13, %c0_14, %c0_15] : memref<1x8x16x32xf32, #tpu.memory_space<vmem>>, vector<1x8x16x32xf32>
    %27 = vector.shape_cast %26 : vector<1x8x16x32xf32> to vector<8x16x32xf32>
    %28 = vector.shape_cast %24 : vector<8x16x32xf32> to vector<1x8x16x32xf32>
    tpu.vector_store %arg5[%25, %c0_13, %c0_14, %c0_15], %28 {strides = array<i32>} : memref<1x8x16x32xf32, #tpu.memory_space<vmem>>, vector<1x8x16x32xf32>,
    %c1_i32 = arith.constant 1 : i32
    return
  }
  func.func @transform_0(%arg0: i32) -> (i32, i32, i32, i32) {
    %c0_i32 = arith.constant 0 : i32
    %c0_i32_0 = arith.constant 0 : i32
    %c0_i32_1 = arith.constant 0 : i32
    %c0_i32_2 = arith.constant 0 : i32
    return %arg0, %c0_i32, %c0_i32_0, %c0_i32_1 : i32, i32, i32, i32
  }
  func.func @transform_1(%arg0: i32) -> (i32, i32) {
    %c0_i32 = arith.constant 0 : i32
    %c0_i32_0 = arith.constant 0 : i32
    %c0_i32_1 = arith.constant 0 : i32
    return %c0_i32, %c0_i32_0 : i32, i32
  }
  func.func @transform_2(%arg0: i32) -> (i32, i32) {
    %c0_i32 = arith.constant 0 : i32
    %c0_i32_0 = arith.constant 0 : i32
    %c0_i32_1 = arith.constant 0 : i32
    return %c0_i32, %c0_i32_0 : i32, i32
  }
  func.func @transform_3(%arg0: i32) -> (i32, i32) {
    %c0_i32 = arith.constant 0 : i32
    %c0_i32_0 = arith.constant 0 : i32
    %c0_i32_1 = arith.constant 0 : i32
    return %c0_i32, %c0_i32_0 : i32, i32
  }
  func.func @transform_4(%arg0: i32) -> (i32, i32, i32, i32) {
    %c0_i32 = arith.constant 0 : i32
    %c0_i32_0 = arith.constant 0 : i32
    %c0_i32_1 = arith.constant 0 : i32
    %c0_i32_2 = arith.constant 0 : i32
    return %arg0, %c0_i32, %c0_i32_0, %c0_i32_1 : i32, i32, i32, i32
  }
}

</mosaic_0001>

<bundles_post_ra>
// kernel: tpu_custom_call.1
= control target key start
LH: loop header
LB: loop body
LE: loop exit
PB: predicated region body
PF: predicated region fallthrough
CT: control target
= control target key end

     0   :  { %9 = vsyncpa [#allocation3], 0  ;;  %s2181_s0 = inlined_call_operand.hbm [shape: f32[2,8,16,32], index: 0, kind: input, shape index: {}]   ;;  %s2182_s1 = inlined_call_operand.hbm [shape: f32[32,32], index: 1, kind: input, shape index: {}]   ;;  %s2183_s2 = inlined_call_operand.vmem [shape: f32[1,32], index: 2, kind: input, shape index: {}]   ;;  %s2184_s3 = inlined_call_operand.hbm [shape: f32[128,128], index: 3, kind: input, shape index: {}]   ;;  %s2185_s4 = inlined_call_operand.hbm [shape: f32[2,8,16,32], index: 4, kind: output, shape index: {}]  }
   0x1   :  { %11 = vsyncpa [#allocation3 + $0x1], 0 }
   0x2   :  { %12 = vsyncpa [#allocation6], 0 }
   0x3   :  { %13 = vsyncpa [#allocation4], 0 }
   0x4   :  { %15 = vsyncpa [#allocation4 + $0x1], 0  ;;  %s1472_s15 = smov 0   ;;  %s1474_s16 = smov 0  }
   0x5   :  { %s1476_s17 = smov 0   ;;  %s1478_s18 = smov 0  }
   0x6 LB: > { %s1493_s19 = sadd.s32 4294967295, %s1439_s18   ;;  %s1043_s20 = sadd.s32 4294967294, %s1439_s18   ;;  %s1439_s18 = sphi %s1478_s18, %s2221_s18   ;;  %s1435_s17 = sphi %s1476_s17, %s2220_s17   ;;  %s1431_s16 = sphi %s1474_s16, %s2219_s16   ;;  %s1427_s15 = sphi %s1472_s15, %s2218_s15  }
   0x7   : > { %p41_p0 = scmp.ne.s32.totalorder %s1431_s16, %s1427_s15  ;;  %p42_p1 = scmp.eq.s32.totalorder %s1493_s19, 0 }
   0x8   : > { %p128_p2 = scmp.eq.s32.totalorder %s1493_s19, 1  ;;  %p134_p3 = scmp.eq.s32.totalorder %s1043_s20, 1 }
   0x9   : > { %p1502_p4 = por %p42_p1, %p41_p0  ;;  %p1044_p5 = scmp.ge.s32.totalorder %s1439_s18, 1 }
   0xa   : > { %p1507_p6 = por %p134_p3, %p41_p0  ;;  %p141_p7 = scmp.lt.s32.totalorder %s1439_s18, 3 }
   0xb   : > { %s152_s25 = sshll.u32 %s2182_s1, 4  ;;  %s1441_s27 = smov [#allocation5]   ;;  %s153_s25 = int_to_ptr.hbm [resolvable:$true] %s152_s25 }
   0xc   : > { %p1515_p8 = pnand %p1044_p5, %p141_p7  ;;  %s154_s28 = sshll.u32 %s1441_s27, 4  ;;  %s155_s28 = int_to_ptr.vmem [resolvable:$true] %s154_s28 }
   0xd   : > { %s169_s5 = sshll.u32 %s2184_s3, 4  ;;  %s1442_s6 = smov 128   ;;  %s170_s5 = int_to_ptr.hbm [resolvable:$true] %s169_s5 }
   0xe   : > { %p1155_p9 = pneg %p1515_p8  ;;  %s1443_s7 = smov 8  }
   0xf   : > { %s1444_s8 = smov [#allocation7]   ;;  %s1534_s10 = sadd.s32 1, %s1439_s18  }
  0x10   : > { %p1156_p10 = pnand %p1155_p9, %p42_p1  ;;  %s171_s9 = sshll.u32 %s1444_s8, 4  ;;  %s172_s9 = int_to_ptr.vmem [resolvable:$true] %s171_s9 }
  0x11   : > { %s28_s11 = sadd.s32 1, %s1435_s17  ;;  %s25_s12 = ssub.s32 %s1439_s18, %s1534_s10 }
  0x12   : > { %1158 = dma.hbm_to_vmem [thread:$0]  (!%p1156_p10), %s153_s25, 512, %s155_s28, [#allocation6], %s1442_s6, %s1442_s6, %s1443_s7  }
  0x13   : > { %1161 = dma.hbm_to_vmem [thread:$0]  (!%p1156_p10), %s170_s5, 2048, %s172_s9, [#allocation6], %s1442_s6, %s1442_s6, %s1443_s7  }
  0x14   : > { %p35_p12 = scmp.ne.s32.totalorder %s1435_s17, %s1431_s16  ;;  %p26_p13 = scmp.eq.s32.totalorder %s25_s12, 0 }
  0x15   : > { %p36_p0 = scmp.eq.s32.totalorder %s1439_s18, 0  ;;  %p1172_p5 = scmp.lt.s32.totalorder %s1439_s18, 2 }
  0x16   : > { %p1544_p3 = por %p128_p2, %p35_p12  ;;  %s185_s20 = sand.u32 1, %s1435_s17  }
  0x17   : > { %s1550_s14 = scalar_select %p26_p13, %s1435_s17, %s28_s11  }
  0x18   : > { %p37_p7 = por %p36_p0, %p35_p12  ;;  %s1048_s23 = sshll.u32 %s185_s20, 7 }
  0x19   : > { %s1109_s24 = sshll.u32 %s1439_s18, 7  ;;  %s189_s29 = scalar_lea.vmem [#allocation2], %s1048_s23 }
  0x1a   : > { %s194_s28 = scalar_lea.hbm %s2181_s0, %s1109_s24  ;;  %s197_s30 = sshll.u32 %s189_s29, 4  ;;  %s198_s30 = int_to_ptr.vmem [resolvable:$true] %s197_s30 }
  0x1b   : > { %s195_s5 = sshll.u32 %s194_s28, 4  ;;  %p1557_p2 = pnand %p1172_p5, %p37_p7  ;;  %s196_s5 = int_to_ptr.hbm [resolvable:$true] %s195_s5 }
  0x1c   : > { %s186_s9 = scalar_lea.sflag [#allocation3], %s185_s20  ;;  %s1339_s11 = sshra.s32 %s196_s5, 4  ;;  %s1340_s11 = int_to_ptr.hbm [resolvable:$true] %s1339_s11 }
  0x1d   : > { %s1341_s12 = scalar_lea.hbm %s1340_s11, 128  ;;  %p1343_p10 = pneg %p1557_p2 }
  0x1e   : > { %p1342_p9 = scmp.ne.s32.totalorder %s1340_s11, %s1341_s12  ;;  %s1346_s25 = scalar_lea.hbm %s2181_s0, 256 }
  0x1f   : > { %p1347_p0 = scmp.lt.s32.totalorder %s1340_s11, %s2181_s0  ;;  %p1348_p5 = scmp.lt.s32.totalorder %s1346_s25, %s1341_s12 }
  0x20   : > { %p1344_p12 = pnand %p1343_p10, %p1342_p9 }
  0x21   : > { %p1349_p7 = por %p1348_p5, %p1347_p0 }
  0x22   : > { %p1345_p13 = pneg %p1344_p12 }
  0x24   : > { %p1350_p11 = pnand %p1349_p7, %p1345_p13 }
  0x26   : > { %1353 = shalt.err (!%p1350_p11)
}
  0x27   : > { %1165 = dma.hbm_to_vmem [thread:$0]  (!%p1557_p2), %s196_s5, 2048, %s198_s30, %s186_s9, %s1442_s6, %s1442_s6, %s1443_s7  }
  0x28   : > { %209 = sbr.rel (%p1515_p8) target bundleno = 624 (0x270), region = 36  ;;  %s1577_s20 = sand.u32 (!%p1515_p8), 1, %s1431_s16  }
  0x29   : > { %s1052_s29 = sshll.u32 (!%p1515_p8), %s1577_s20, 7  ;;  %s212_s11 = scalar_lea.sflag (!%p1515_p8), [#allocation3], %s1577_s20 }
  0x2a   : > { %s1583_s12 = scalar_lea.vmem (!%p1515_p8), [#allocation2], %s1052_s29 }
  0x2d   : > { %1414 = dma.done.wait (%p1502_p4), %s212_s11, 2048  }
  0x2e   : > { %1416 = vsyncadd (%p1502_p4), %s212_s11, 4294965248 }
  0x2f   : > { %1418 = dma.done.wait (%p42_p1), [#allocation6], 2560  }
  0x30   : > { %1420 = vsyncadd (%p42_p1), [#allocation6], 4294964736  ;;  %vm283_vm0 = vcmask 261120   ;;  %v1594_v0 = vld [vmem:[%s1583_s12 + $0x78] sm:$0xff]  ;;  %v543_v2 = vld [vmem:[#allocation5 + $0x10] sm:$0xff]  ;;  %s1823_s6 = scalar_lea.vmem [#allocation8], %s1052_s29 }
  0x31   : > { %v544_v1 = vld [vmem:[#allocation5 + $0x18] sm:$0xff]  ;;  %1056 = vmatpush.xpose.msk.msra.mxu0 %vm283_vm0, %v1594_v0  ;;  %v1599_v3 = vld [vmem:[%s1583_s12 + $0x70] sm:$0xff]  ;;  %v542_v4 = vld [vmem:[#allocation5 + $0x8] sm:$0xff]  ;;  %1111 = vmatpush.xpose.msk.msra.mxu3 %vm283_vm0, %v1594_v0  ;;  %s1110_s7 = sshll.u32 %s1493_s19, 7  ;;  %s948_s8 = sshll.u32 %s1823_s6, 4  ;;  %s949_s8 = int_to_ptr.vmem [resolvable:$true] %s948_s8 }
  0x32   : > { %561 = vmatpush.msra.mxu1 %v544_v1  ;;  %v541_v5 = vld [vmem:[#allocation5] sm:$0xff]  ;;  %v1607_v7 = vld [vmem:[%s1583_s12 + $0x68] sm:$0xff]  ;;  %v278_v10 = vld [vmem:[%s1583_s12 + $0x58] sm:$0xff]  ;;  %s947_s5 = scalar_lea.hbm %s2185_s4, %s1110_s7  ;;  %s936_s24 = scalar_lea.sflag [#allocation4], %s1577_s20 }
  0x33   : > { %v267_v6 = vld [vmem:[%s1583_s12] sm:$0xff]  ;;  %v268_v9 = vld [vmem:[%s1583_s12 + $0x8] sm:$0xff]  ;;  %v277_v11 = vld [vmem:[%s1583_s12 + $0x50] sm:$0xff]  ;;  %s950_s9 = sshll.u32 %s947_s5, 4  ;;  %s1389_s29 = scalar_lea.hbm %s2185_s4, 256  ;;  %s951_s9 = int_to_ptr.hbm [resolvable:$true] %s950_s9 }
  0x34   : > { %562 = vmatpush.msra.mxu1 %v543_v2  ;;  %v279_v8 = vld [vmem:[%s1583_s12 + $0x60] sm:$0xff]  ;;  %v269_v12 = vld [vmem:[%s1583_s12 + $0x10] sm:$0xff]  ;;  %v276_v13 = vld [vmem:[%s1583_s12 + $0x48] sm:$0xff]  ;;  %s1383_s23 = sshra.s32 %s951_s9, 4  ;;  %s1384_s23 = int_to_ptr.hbm [resolvable:$true] %s1383_s23 }
  0x35   : > { %1057 = vmatpush.xpose.msk.msra.mxu0 %vm283_vm0, %v1599_v3  ;;  %1112 = vmatpush.xpose.msk.msra.mxu3 %vm283_vm0, %v1599_v3  ;;  %v275_v14 = vld [vmem:[%s1583_s12 + $0x40] sm:$0xff]  ;;  %v270_v15 = vld [vmem:[%s1583_s12 + $0x18] sm:$0xff]  ;;  %v273_v17 = vld [vmem:[%s1583_s12 + $0x30] sm:$0xff]  ;;  %s1385_s25 = scalar_lea.hbm %s1384_s23, 128  ;;  %p1390_p11 = scmp.lt.s32.totalorder %s1384_s23, %s2185_s4 }
  0x36   : > { %563 = vmatpush.msra.mxu1 %v542_v4  ;;  %v274_v16 = vld [vmem:[%s1583_s12 + $0x38] sm:$0xff]  ;;  %v271_v18 = vld [vmem:[%s1583_s12 + $0x20] sm:$0xff]  ;;  %v272_v19 = vld [vmem:[%s1583_s12 + $0x28] sm:$0xff]  ;;  %p1386_p1 = scmp.ne.s32.totalorder %s1384_s23, %s1385_s25  ;;  %p1391_p2 = scmp.lt.s32.totalorder %s1389_s29, %s1385_s25 }
  0x37   : > { %v251_v29 = vld [vmem:[#allocation7] sm:$0xff]  ;;  %v252_v34 = vld [vmem:[#allocation7 + $0x8] sm:$0xff]  ;;  %v253_v39 = vld [vmem:[#allocation7 + $0x10] sm:$0xff] }
  0x38   : > { %564 = vmatpush.msra.mxu1 %v541_v5  ;;  %v254_v44 = vld [vmem:[#allocation7 + $0x18] sm:$0xff]  ;;  %v255_v50 = vld [vmem:[#allocation7 + $0x20] sm:$0xff]  ;;  %v256_v56 = vld [vmem:[#allocation7 + $0x28] sm:$0xff]  ;;  %p1387_p4 = pnand %p1386_p1, %p1544_p3  ;;  %p1392_p9 = por %p1391_p2, %p1390_p11 }
  0x39   : > { %1088 = vmatmul.msk.f32.vlgmr.msra.gmra.mxu1 %vm283_vm0, %v267_v6  ;;  %1058 = vmatpush.xpose.msk.msra.mxu0 %vm283_vm0, %v1607_v7  ;;  %v257_v62 = vld [vmem:[#allocation7 + $0x30] sm:$0xff] }
  0x3a   : > { %1113 = vmatpush.xpose.msk.msra.mxu3 %vm283_vm0, %v1607_v7  ;;  %p1388_p8 = pneg %p1387_p4 }
  0x3c   : > { %p1393_p10 = pnand %p1392_p9, %p1388_p8 }
  0x3d   : > { %1059 = vmatpush.xpose.msk.msra.mxu0 %vm283_vm0, %v279_v8 }
  0x3e   : > { %1114 = vmatpush.xpose.msk.msra.mxu3 %vm283_vm0, %v279_v8 }
  0x41   : > { %1089 = vmatmul.msk.f32.gmra.mxu1 %vm283_vm0, %v268_v9  ;;  %1060 = vmatpush.xpose.msk.msra.mxu0 %vm283_vm0, %v278_v10 }
  0x42   : > { %1115 = vmatpush.xpose.msk.msra.mxu3 %vm283_vm0, %v278_v10 }
  0x45   : > { %1061 = vmatpush.xpose.msk.msra.mxu0 %vm283_vm0, %v277_v11 }
  0x46   : > { %1116 = vmatpush.xpose.msk.msra.mxu3 %vm283_vm0, %v277_v11 }
  0x49   : > { %1090 = vmatmul.msk.f32.gmra.mxu1 %vm283_vm0, %v269_v12  ;;  %1062 = vmatpush.xpose.msk.msra.mxu0 %vm283_vm0, %v276_v13 }
  0x4a   : > { %1117 = vmatpush.xpose.msk.msra.mxu3 %vm283_vm0, %v276_v13 }
  0x4d   : > { %1063 = vmatpush.xpose.msk.msra.mxu0 %vm283_vm0, %v275_v14 }
  0x4e   : > { %1118 = vmatpush.xpose.msk.msra.mxu3 %vm283_vm0, %v275_v14 }
  0x51   : > { %1091 = vmatmul.msk.f32.gmra.mxu1 %vm283_vm0, %v270_v15  ;;  %1064 = vmatpush.xpose.msk.msra.mxu0 %vm283_vm0, %v274_v16 }
  0x52   : > { %1119 = vmatpush.xpose.msk.msra.mxu3 %vm283_vm0, %v274_v16 }
  0x55   : > { %1065 = vmatpush.xpose.msk.msra.mxu0 %vm283_vm0, %v273_v17 }
  0x56   : > { %1120 = vmatpush.xpose.msk.msra.mxu3 %vm283_vm0, %v273_v17 }
  0x59   : > { %1092 = vmatmul.msk.f32.gmra.mxu1 %vm283_vm0, %v271_v18  ;;  %1066 = vmatpush.xpose.msk.msra.mxu0 %vm283_vm0, %v272_v19 }
  0x5a   : > { %1121 = vmatpush.xpose.msk.msra.mxu3 %vm283_vm0, %v272_v19 }
  0x5d   : > { %1067 = vmatpush.xpose.msk.msra.mxu0 %vm283_vm0, %v271_v18 }
  0x5e   : > { %1122 = vmatpush.xpose.msk.msra.mxu3 %vm283_vm0, %v271_v18 }
  0x61   : > { %1093 = vmatmul.msk.f32.gmra.mxu1 %vm283_vm0, %v272_v19  ;;  %1068 = vmatpush.xpose.msk.msra.mxu0 %vm283_vm0, %v270_v15 }
  0x62   : > { %1123 = vmatpush.xpose.msk.msra.mxu3 %vm283_vm0, %v270_v15 }
  0x65   : > { %1069 = vmatpush.xpose.msk.msra.mxu0 %vm283_vm0, %v269_v12 }
  0x66   : > { %1124 = vmatpush.xpose.msk.msra.mxu3 %vm283_vm0, %v269_v12 }
  0x69   : > { %1094 = vmatmul.msk.f32.gmra.mxu1 %vm283_vm0, %v273_v17  ;;  %1070 = vmatpush.xpose.msk.msra.mxu0 %vm283_vm0, %v268_v9 }
  0x6a   : > { %1125 = vmatpush.xpose.msk.msra.mxu3 %vm283_vm0, %v268_v9 }
  0x6d   : > { %1071 = vmatpush.xpose.msk.msra.mxu0 %vm283_vm0, %v267_v6 }
  0x6e   : > { %1126 = vmatpush.xpose.msk.msra.mxu3 %vm283_vm0, %v267_v6 }
  0x70   : > { %1072 = vmatmul.msk.f32.vlgmr.msra.gmra.mxu0 %vm283_vm0, %v267_v6 }
  0x71   : > { %1095 = vmatmul.msk.f32.gmra.mxu1 %vm283_vm0, %v274_v16  ;;  %1082 = vmatmul.msk.f32.vlgmr.msra.gmra.mxu3 %vm283_vm0, %v277_v11 }
  0x78   : > { %1073 = vmatmul.msk.f32.gmra.mxu0 %vm283_vm0, %v268_v9  ;;  %v261_v9 = vld [vmem:[#allocation7 + $0x50] sm:$0xff] }
  0x79   : > { %1096 = vmatmul.msk.f32.gmra.mxu1 %vm283_vm0, %v275_v14  ;;  %1083 = vmatmul.msk.f32.gmra.mxu3 %vm283_vm0, %v278_v10 }
  0x80   : > { %1074 = vmatmul.msk.f32.gmra.mxu0 %vm283_vm0, %v269_v12  ;;  %v259_v12 = vld [vmem:[#allocation7 + $0x40] sm:$0xff] }
  0x81   : > { %1097 = vmatmul.msk.f32.gmra.mxu1 %vm283_vm0, %v276_v13  ;;  %1084 = vmatmul.msk.f32.gmra.mxu3 %vm283_vm0, %v279_v8 }
  0x88   : > { %1075 = vmatmul.msk.f32.gmra.mxu0 %vm283_vm0, %v270_v15 }
  0x89   : > { %1098 = vmatmul.msk.f32.gmra.mxu1 %vm283_vm0, %v277_v11  ;;  %1085 = vmatmul.msk.f32.gmra.mxu3 %vm283_vm0, %v1607_v7 }
  0x90   : > { %1076 = vmatmul.msk.f32.gmra.mxu0 %vm283_vm0, %v271_v18 }
  0x91   : > { %1099 = vmatmul.msk.f32.gmra.mxu1 %vm283_vm0, %v278_v10  ;;  %1086 = vmatmul.msk.f32.gmra.mxu3 %vm283_vm0, %v1599_v3 }
  0x98   : > { %1077 = vmatmul.msk.f32.gmra.mxu0 %vm283_vm0, %v272_v19 }
  0x99   : > { %1100 = vmatmul.msk.f32.gmra.mxu1 %vm283_vm0, %v279_v8  ;;  %1087 = vmatmul.msk.f32.gmra.mxu3 %vm283_vm0, %v1594_v0  ;;  %v1740_v8 = vld [vmem:[%s2183_s2] ss:$0 sm:$0xff] }
  0xa0   : > { %1078 = vmatmul.msk.f32.gmra.mxu0 %vm283_vm0, %v273_v17 }
  0xa1   : > { %1101 = vmatmul.msk.f32.gmra.mxu1 %vm283_vm0, %v1607_v7 }
  0xa8   : > { %1079 = vmatmul.msk.f32.gmra.mxu0 %vm283_vm0, %v274_v16 }
  0xa9   : > { %1102 = vmatmul.msk.f32.gmra.mxu1 %vm283_vm0, %v1599_v3  ;;  %v258_v3 = vld [vmem:[#allocation7 + $0x38] sm:$0xff] }
  0xb0   : > { %1080 = vmatmul.msk.f32.gmra.mxu0 %vm283_vm0, %v275_v14 }
  0xb1   : > { %1103 = vmatmul.msk.f32.gmra.mxu1 %vm283_vm0, %v1594_v0 }
  0xb6   : > { %v1690_v20 = vpop.f32.mrf.mxu1 }
  0xb8   : > { %1081 = vmatmul.msk.f32.gmra.mxu0 %vm283_vm0, %v276_v13 }
  0xbe   : > { %v1693_v21 = vpop.f32.mrf.mxu1 }
  0xc6   : > { %v1695_v22 = vpop.f32.mrf.mxu1 }
  0xce   : > { %v1697_v23 = vpop.f32.mrf.mxu1 }
  0xd6   : > { %v1699_v24 = vpop.f32.mrf.mxu1 }
  0xde   : > { %v1701_v25 = vpop.f32.mrf.mxu1 }
  0xe6   : > { %v1703_v26 = vpop.f32.mrf.mxu1 }
  0xed   : > { %v349_v27 = vpop.f32.mrf.mxu0 }
  0xee   : > { %v1705_v28 = vpop.f32.mrf.mxu1  ;;  %v397_v30 = vmul.f32 0.17677669, %v349_v27 }
  0xf0   : > { %v1707_v31 = vadd.f32 %v397_v30, %v251_v29 }
  0xf2   : > { %429 = vmax.xlane.f32.xlu0 %v1707_v31 }
  0xf4   : > { %v379_v47 = vpop.f32.mrf.mxu3 }
  0xf5   : > { %v352_v32 = vpop.f32.mrf.mxu0  ;;  %v407_v7 = vmul.f32 0.17677669, %v379_v47 }
  0xf6   : > { %v1710_v33 = vpop.f32.mrf.mxu1  ;;  %v398_v35 = vmul.f32 0.17677669, %v352_v32 }
  0xf7   : > { %v1744_v16 = vadd.f32 %v407_v7, %v261_v9 }
  0xf8   : > { %v1712_v36 = vadd.f32 %v398_v35, %v252_v34  ;;  %v262_v34 = vld [vmem:[#allocation7 + $0x58] sm:$0xff]  ;;  %v265_v35 = vld [vmem:[#allocation7 + $0x70] sm:$0xff] }
  0xfa   : > { %431 = vmax.xlane.f32.xlu0 %v1712_v36 }
  0xfc   : > { %v382_v53 = vpop.f32.mrf.mxu3 }
  0xfd   : > { %v355_v37 = vpop.f32.mrf.mxu0  ;;  %v408_v29 = vmul.f32 0.17677669, %v382_v53  ;;  %v263_v53 = vld [vmem:[#allocation7 + $0x60] sm:$0xff] }
  0xfe   : > { %v1715_v38 = vpop.f32.mrf.mxu1  ;;  %v399_v40 = vmul.f32 0.17677669, %v355_v37 }
 0x100   : > { %v1717_v41 = vadd.f32 %v399_v40, %v253_v39  ;;  %v260_v39 = vld [vmem:[#allocation7 + $0x48] sm:$0xff] }
 0x102   : > { %433 = vmax.xlane.f32.xlu1 %v1717_v41 }
 0x104   : > { %v385_v59 = vpop.f32.mrf.mxu3 }
 0x105   : > { %v358_v42 = vpop.f32.mrf.mxu0 }
 0x106   : > { %v1720_v43 = vpop.f32.mrf.mxu1  ;;  %v400_v45 = vmul.f32 0.17677669, %v358_v42  ;;  %v1753_v42 = vadd.f32 %v408_v29, %v262_v34 }
 0x108   : > { %v1722_v46 = vadd.f32 %v400_v45, %v254_v44  ;;  %v597_v45 = vadd.f32 %v1740_v8, %v1720_v43  ;;  %v264_v43 = vld [vmem:[#allocation7 + $0x68] sm:$0xff] }
 0x10a   : > { %435 = vmax.xlane.f32.xlu1 %v1722_v46 }
 0x10c   : > { %v388_v5 = vpop.f32.mrf.mxu3 }
 0x10d   : > { %v361_v48 = vpop.f32.mrf.mxu0 }
 0x10e   : > { %v599_v49 = vpop.f32.mrf.mxu1  ;;  %v401_v51 = vmul.f32 0.17677669, %v361_v48  ;;  %v594_v48 = vadd.f32 %v1740_v8, %v1715_v38  ;;  %v588_v38 = vadd.f32 %v1740_v8, %v1705_v28  ;;  %v579_v28 = vadd.f32 %v1740_v8, %v1699_v24 }
 0x10f   : > { %v600_v32 = vadd.f32 %v1740_v8, %v599_v49  ;;  %v410_v49 = vmul.f32 0.17677669, %v388_v5  ;;  %v570_v24 = vadd.f32 %v1740_v8, %v1693_v21 }
 0x110   : > { %v1725_v52 = vadd.f32 %v401_v51, %v255_v50  ;;  %v591_v50 = vadd.f32 %v1740_v8, %v1710_v33  ;;  %v409_v51 = vmul.f32 0.17677669, %v385_v59 }
 0x112   : > { %437 = vmax.xlane.f32.xlu2 %v1725_v52 }
 0x114   : > { %v391_v19 = vpop.f32.mrf.mxu3 }
 0x115   : > { %v364_v54 = vpop.f32.mrf.mxu0  ;;  %v411_v30 = vmul.f32 0.17677669, %v391_v19 }
 0x116   : > { %v602_v55 = vpop.f32.mrf.mxu1  ;;  %v402_v57 = vmul.f32 0.17677669, %v364_v54  ;;  %v1770_v54 = vadd.f32 %v410_v49, %v264_v43 }
 0x117   : > { %v603_v27 = vadd.f32 %v1740_v8, %v602_v55  ;;  %v1755_v44 = vadd.f32 %v411_v30, %v265_v35  ;;  %v585_v55 = vadd.f32 %v1740_v8, %v1703_v26  ;;  %v266_v26 = vld [vmem:[#allocation7 + $0x78] sm:$0xff] }
 0x118   : > { %v1728_v58 = vadd.f32 %v402_v57, %v256_v56  ;;  %v1774_v56 = vadd.f32 %v409_v51, %v263_v53  ;;  %v582_v57 = vadd.f32 %v1740_v8, %v1701_v25  ;;  %v573_v25 = vadd.f32 %v1740_v8, %v1695_v22 }
 0x11a   : > { %439 = vmax.xlane.f32.xlu2 %v1728_v58 }
 0x11c   : > { %v394_v33 = vpop.f32.mrf.mxu3 }
 0x11d   : > { %v367_v60 = vpop.f32.mrf.mxu0  ;;  %v412_v59 = vmul.f32 0.17677669, %v394_v33 }
 0x11e   : > { %v605_v61 = vpop.f32.mrf.mxu1  ;;  %v403_v63 = vmul.f32 0.17677669, %v367_v60  ;;  %v576_v60 = vadd.f32 %v1740_v8, %v1697_v23 }
 0x11f   : > { %v606_v17 = vadd.f32 %v1740_v8, %v605_v61  ;;  %v1786_v61 = vadd.f32 %v412_v59, %v266_v26 }
 0x120   : > { %v1731_v0 = vadd.f32 %v403_v63, %v257_v62  ;;  %v567_v62 = vadd.f32 %v1740_v8, %v1690_v20 }
 0x122   : > { %441 = vmax.xlane.f32.xlu0 %v1731_v0 }
 0x125   : > { %v370_v1 = vpop.f32.mrf.mxu0 }
 0x126   : > { %v608_v2 = vpop.f32.mrf.mxu1  ;;  %v404_v4 = vmul.f32 0.17677669, %v370_v1 }
 0x127   : > { %v609_v13 = vadd.f32 %v1740_v8, %v608_v2 }
 0x128   : > { %v1734_v6 = vadd.f32 %v404_v4, %v258_v3 }
 0x12a   : > { %443 = vmax.xlane.f32.xlu1 %v1734_v6 }
 0x12d   : > { %v373_v10 = vpop.f32.mrf.mxu0 }
 0x12e   : > { %v611_v11 = vpop.f32.mrf.mxu1  ;;  %v405_v14 = vmul.f32 0.17677669, %v373_v10 }
 0x12f   : > { %v612_v15 = vadd.f32 %v1740_v8, %v611_v11 }
 0x130   : > { %v1747_v18 = vadd.f32 %v405_v14, %v259_v12 }
 0x131   : > { %614 = vmatpush.msra.mxu2 %v612_v15  ;;  %1127 = vmatpush.msrb.mxu3 %v612_v15 }
 0x132   : > { %445 = vmax.xlane.f32.xlu2 %v1747_v18  ;;  %449 = vmax.xlane.f32.xlu1 %v1744_v16 }
 0x133   : > { %615 = vmatpush.msra.mxu2 %v609_v13  ;;  %1128 = vmatpush.msrb.mxu3 %v609_v13 }
 0x135   : > { %616 = vmatpush.msra.mxu2 %v606_v17  ;;  %1129 = vmatpush.msrb.mxu3 %v606_v17  ;;  %v376_v37 = vpop.f32.mrf.mxu0 }
 0x136   : > { %v406_v40 = vmul.f32 0.17677669, %v376_v37 }
 0x137   : > { %617 = vmatpush.msra.mxu2 %v603_v27  ;;  %1130 = vmatpush.msrb.mxu3 %v603_v27 }
 0x138   : > { %v1759_v47 = vadd.f32 %v406_v40, %v260_v39 }
 0x139   : > { %618 = vmatpush.msra.mxu2 %v600_v32  ;;  %1131 = vmatpush.msrb.mxu3 %v600_v32 }
 0x13a   : > { %451 = vmax.xlane.f32.xlu2 %v1753_v42  ;;  %457 = vmax.xlane.f32.xlu1 %v1755_v44 }
 0x13b   : > { %619 = vmatpush.msra.mxu2 %v597_v45  ;;  %1132 = vmatpush.msrb.mxu3 %v597_v45 }
 0x13c   : > { %447 = vmax.xlane.f32.xlu0 %v1759_v47 }
 0x13d   : > { %620 = vmatpush.msra.mxu2 %v594_v48  ;;  %1133 = vmatpush.msrb.mxu3 %v594_v48 }
 0x13f   : > { %621 = vmatpush.msra.mxu2 %v591_v50  ;;  %1134 = vmatpush.msrb.mxu3 %v591_v50 }
 0x141   : > { %622 = vmatpush.msra.mxu2 %v588_v38  ;;  %1135 = vmatpush.msrb.mxu3 %v588_v38 }
 0x142   : > { %455 = vmax.xlane.f32.xlu2 %v1770_v54 }
 0x143   : > { %623 = vmatpush.msra.mxu2 %v585_v55  ;;  %1136 = vmatpush.msrb.mxu3 %v585_v55 }
 0x144   : > { %453 = vmax.xlane.f32.xlu0 %v1774_v56 }
 0x145   : > { %624 = vmatpush.msra.mxu2 %v582_v57  ;;  %1137 = vmatpush.msrb.mxu3 %v582_v57 }
 0x147   : > { %625 = vmatpush.msra.mxu2 %v579_v28  ;;  %1138 = vmatpush.msrb.mxu3 %v579_v28 }
 0x149   : > { %626 = vmatpush.msra.mxu2 %v576_v60  ;;  %1139 = vmatpush.msrb.mxu3 %v576_v60 }
 0x14b   : > { %627 = vmatpush.msra.mxu2 %v573_v25  ;;  %1140 = vmatpush.msrb.mxu3 %v573_v25 }
 0x14c   : > { %459 = vmax.xlane.f32.xlu0 %v1786_v61 }
 0x14d   : > { %628 = vmatpush.msra.mxu2 %v570_v24  ;;  %1141 = vmatpush.msrb.mxu3 %v570_v24 }
 0x14f   : > { %629 = vmatpush.msra.mxu2 %v567_v62  ;;  %1142 = vmatpush.msrb.mxu3 %v567_v62 }
 0x165   : > { %v430_v23 = vpop.xlane.xlu0 %429 }
 0x166   : > { %v461_v22 = vsub.f32 %v1707_v31, %v430_v23 }
 0x168   : > { %v477_v63 = vmul.f32 1.442695, %v461_v22 }
 0x16a   : > { %1215 = vpow2.f32 %v477_v63 }
 0x16d   : > { %v432_v1 = vpop.xlane.xlu0 %431 }
 0x16e   : > { %v462_v2 = vsub.f32 %v1712_v36, %v432_v1 }
 0x170   : > { %v1216_v21 = vpop.eup %1215  ;;  %v479_v3 = vmul.f32 1.442695, %v462_v2 }
 0x171   : > { %509 = vadd.xlane.f32.xlu1 %v1216_v21  ;;  %630 = vmatmul.f32.vlgmr.msra.gmra.mxu2 %v1216_v21 }
 0x172   : > { %1217 = vpow2.f32 %v479_v3 }
 0x175   : > { %v434_v20 = vpop.xlane.xlu1 %433 }
 0x176   : > { %v463_v4 = vsub.f32 %v1717_v41, %v434_v20 }
 0x178   : > { %v1796_v5 = vpop.eup %1217  ;;  %v481_v7 = vmul.f32 1.442695, %v463_v4 }
 0x179   : > { %633 = vmatmul.f32.gmra.mxu2 %v1796_v5 }
 0x17a   : > { %1219 = vpow2.f32 %v481_v7 }
 0x17d   : > { %v436_v31 = vpop.xlane.xlu1 %435 }
 0x17e   : > { %v464_v8 = vsub.f32 %v1722_v46, %v436_v31 }
 0x180   : > { %v1800_v9 = vpop.eup %1219  ;;  %v483_v36 = vmul.f32 1.442695, %v464_v8 }
 0x181   : > { %636 = vmatmul.f32.gmra.mxu2 %v1800_v9 }
 0x182   : > { %1221 = vpow2.f32 %v483_v36 }
 0x185   : > { %v438_v10 = vpop.xlane.xlu2 %437 }
 0x186   : > { %v465_v11 = vsub.f32 %v1725_v52, %v438_v10 }
 0x188   : > { %v1804_v12 = vpop.eup %1221  ;;  %v485_v41 = vmul.f32 1.442695, %v465_v11 }
 0x189   : > { %639 = vmatmul.f32.gmra.mxu2 %v1804_v12 }
 0x18a   : > { %1223 = vpow2.f32 %v485_v41 }
 0x18d   : > { %v440_v13 = vpop.xlane.xlu2 %439 }
 0x18e   : > { %v466_v14 = vsub.f32 %v1728_v58, %v440_v13 }
 0x190   : > { %v1224_v15 = vpop.eup %1223  ;;  %v487_v46 = vmul.f32 1.442695, %v466_v14 }
 0x191   : > { %642 = vmatmul.f32.gmra.mxu2 %v1224_v15 }
 0x192   : > { %1225 = vpow2.f32 %v487_v46 }
 0x195   : > { %v442_v17 = vpop.xlane.xlu0 %441 }
 0x196   : > { %v467_v19 = vsub.f32 %v1731_v0, %v442_v17 }
 0x198   : > { %v1226_v27 = vpop.eup %1225  ;;  %v489_v29 = vmul.f32 1.442695, %v467_v19 }
 0x199   : > { %645 = vmatmul.f32.gmra.mxu2 %v1226_v27 }
 0x19a   : > { %1227 = vpow2.f32 %v489_v29 }
 0x19d   : > { %v444_v52 = vpop.xlane.xlu1 %443 }
 0x19e   : > { %v468_v30 = vsub.f32 %v1734_v6, %v444_v52 }
 0x1a0   : > { %v1228_v32 = vpop.eup %1227  ;;  %v491_v34 = vmul.f32 1.442695, %v468_v30 }
 0x1a1   : > { %648 = vmatmul.f32.gmra.mxu2 %v1228_v32 }
 0x1a2   : > { %1229 = vpow2.f32 %v491_v34 }
 0x1a5   : > { %v446_v35 = vpop.xlane.xlu2 %445  ;;  %v450_v58 = vpop.xlane.xlu1 %449 }
 0x1a6   : > { %v469_v37 = vsub.f32 %v1747_v18, %v446_v35  ;;  %v471_v39 = vsub.f32 %v1744_v16, %v450_v58 }
 0x1a8   : > { %v1230_v40 = vpop.eup %1229  ;;  %v493_v45 = vmul.f32 1.442695, %v469_v37  ;;  %v497_v0 = vmul.f32 1.442695, %v471_v39 }
 0x1a9   : > { %651 = vmatmul.f32.gmra.mxu2 %v1230_v40 }
 0x1aa   : > { %1231 = vpow2.f32 %v493_v45 }
 0x1ab   : > { %1233 = vpow2.f32 %v497_v0 }
 0x1ad   : > { %v452_v48 = vpop.xlane.xlu2 %451  ;;  %v458_v49 = vpop.xlane.xlu1 %457 }
 0x1ae   : > { %v472_v6 = vsub.f32 %v1753_v42, %v452_v48  ;;  %v475_v50 = vsub.f32 %v1755_v44, %v458_v49 }
 0x1af   : > { %v448_v51 = vpop.xlane.xlu0 %447 }
 0x1b0   : > { %v470_v43 = vsub.f32 %v1759_v47, %v448_v51  ;;  %v1232_v53 = vpop.eup %1231  ;;  %v499_v38 = vmul.f32 1.442695, %v472_v6  ;;  %v505_v18 = vmul.f32 1.442695, %v475_v50 }
 0x1b1   : > { %v1234_v55 = vpop.eup %1233  ;;  %654 = vmatmul.f32.gmra.mxu2 %v1232_v53 }
 0x1b2   : > { %v495_v16 = vmul.f32 1.442695, %v470_v43  ;;  %1235 = vpow2.f32 %v499_v38  ;;  %529 = vadd.xlane.f32.xlu2 %v1234_v55 }
 0x1b3   : > { %1237 = vpow2.f32 %v505_v18 }
 0x1b4   : > { %1239 = vpow2.f32 %v495_v16 }
 0x1b5   : > { %v456_v60 = vpop.xlane.xlu2 %455 }
 0x1b7   : > { %v454_v33 = vpop.xlane.xlu0 %453 }
 0x1b8   : > { %v473_v57 = vsub.f32 %v1774_v56, %v454_v33  ;;  %v1236_v28 = vpop.eup %1235  ;;  %v474_v56 = vsub.f32 %v1770_v54, %v456_v60 }
 0x1b9   : > { %v1238_v42 = vpop.eup %1237  ;;  %531 = vadd.xlane.f32.xlu0 %v1236_v28 }
 0x1ba   : > { %v501_v59 = vmul.f32 1.442695, %v473_v57  ;;  %v1240_v44 = vpop.eup %1239  ;;  %672 = vmatmul.f32.vlgmr.msrb.gmra.mxu3 %v1238_v42  ;;  %511 = vadd.xlane.f32.xlu2 %v1796_v5  ;;  %v503_v62 = vmul.f32 1.442695, %v474_v56 }
 0x1bb   : > { %657 = vmatmul.f32.gmra.mxu2 %v1240_v44 }
 0x1bc   : > { %1241 = vpow2.f32 %v501_v59 }
 0x1bf   : > { %v460_v47 = vpop.xlane.xlu0 %459 }
 0x1c0   : > { %v476_v26 = vsub.f32 %v1786_v61, %v460_v47 }
 0x1c1   : > { %513 = vadd.xlane.f32.xlu0 %v1800_v9 }
 0x1c2   : > { %v1242_v25 = vpop.eup %1241  ;;  %v507_v24 = vmul.f32 1.442695, %v476_v26  ;;  %517 = vadd.xlane.f32.xlu2 %v1224_v15 }
 0x1c3   : > { %533 = vadd.xlane.f32.xlu1 %v1242_v25  ;;  %660 = vmatmul.f32.gmra.mxu2 %v1234_v55 }
 0x1c4   : > { %1243 = vpow2.f32 %v507_v24 }
 0x1c5   : > { %1245 = vpow2.f32 %v503_v62 }
 0x1c9   : > { %519 = vadd.xlane.f32.xlu0 %v1226_v27 }
 0x1ca   : > { %v1244_v23 = vpop.eup %1243  ;;  %523 = vadd.xlane.f32.xlu2 %v1230_v40 }
 0x1cb   : > { %515 = vadd.xlane.f32.xlu1 %v1804_v12  ;;  %663 = vmatmul.f32.gmra.mxu2 %v1236_v28  ;;  %v1246_v61 = vpop.eup %1245 }
 0x1cc   : > { %675 = vmatmul.f32.gmra.mxu3 %v1244_v23 }
 0x1d1   : > { %525 = vadd.xlane.f32.xlu0 %v1232_v53 }
 0x1d2   : > { %535 = vadd.xlane.f32.xlu2 %v1246_v61 }
 0x1d3   : > { %521 = vadd.xlane.f32.xlu1 %v1228_v32  ;;  %666 = vmatmul.f32.gmra.mxu2 %v1242_v25 }
 0x1d9   : > { %537 = vadd.xlane.f32.xlu0 %v1238_v42 }
 0x1db   : > { %527 = vadd.xlane.f32.xlu1 %v1240_v44  ;;  %669 = vmatmul.f32.gmra.mxu2 %v1246_v61 }
 0x1e3   : > { %539 = vadd.xlane.f32.xlu1 %v1244_v23 }
 0x1e4   : > { %v510_v54 = vpop.xlane.xlu1 %509 }
 0x1e5   : > { %1247 = vrcp.f32 %v510_v54  ;;  %v690_v2 = vand.u32 2147483648, %v510_v54  ;;  %v688_v3 = vand.u32 2147483647, %v510_v54  ;;  %vm684_vm2 = vweird.f32 %v510_v54 }
 0x1e7   : > { %v691_v4 = vor.u32 1.1754944e-38, %v690_v2  ;;  %vm689_vm4 = vcmp.eq.f32.partialorder %v688_v3, 8.507059e+37 }
 0x1eb   : > { %v1248_v22 = vpop.eup %1247 }
 0x1ec   : > { %v680_v63 = vmul.f32 %v1248_v22, %v510_v54  ;;  %vm685_vm1 = vweird.f32 %v1248_v22 }
 0x1ed   : > { %vm686_vm3 = vmor %vm684_vm2, %vm685_vm1 }
 0x1ee   : > { %v681_v1 = vsub.f32 1.0, %v680_v63 }
 0x1f0   : > { %v682_v21 = vmul.f32 %v1248_v22, %v681_v1 }
 0x1f2   : > { %v683_v20 = vadd.f32 %v1248_v22, %v682_v21 }
 0x1f4   : > { %v631_v5 = vpop.f32.mrf.mxu2  ;;  %v687_v7 = vsel %vm686_vm3, %v1248_v22, %v683_v20 }
 0x1f5   : > { %v692_v31 = vsel %vm689_vm4, %v691_v4, %v687_v7 }
 0x1f6   : > { %v693_v8 = vmul.f32 %v692_v31, %v631_v5 }
 0x1f8   : > { %919 = vst.msk [vmem:[%s1823_s6] sm:$0xff] %vm283_vm0, %v693_v8 }
 0x1fc   : > { %v1827_v9 = vpop.f32.mrf.mxu2 }
 0x204   : > { %v1829_v36 = vpop.f32.mrf.mxu2 }
 0x20c   : > { %v1831_v10 = vpop.f32.mrf.mxu2 }
 0x214   : > { %v1833_v11 = vpop.f32.mrf.mxu2 }
 0x21c   : > { %v1835_v12 = vpop.f32.mrf.mxu2 }
 0x224   : > { %v1837_v41 = vpop.f32.mrf.mxu2 }
 0x225   : > { %v1839_v13 = vpop.xlane.xlu2 %529 }
 0x226   : > { %1249 = vrcp.f32 %v1839_v13  ;;  %v840_v35 = vand.u32 2147483648, %v1839_v13  ;;  %v838_v45 = vand.u32 2147483647, %v1839_v13  ;;  %vm834_vm5 = vweird.f32 %v1839_v13 }
 0x228   : > { %v841_v51 = vor.u32 1.1754944e-38, %v840_v35  ;;  %vm1877_vm10 = vcmp.eq.f32.partialorder %v838_v45, 8.507059e+37 }
 0x22c   : > { %v1842_v14 = vpop.f32.mrf.mxu2  ;;  %v1844_v15 = vpop.eup %1249 }
 0x22d   : > { %v1846_v46 = vpop.xlane.xlu0 %531  ;;  %v512_v17 = vpop.xlane.xlu2 %511  ;;  %v830_v19 = vmul.f32 %v1844_v15, %v1839_v13  ;;  %vm835_vm7 = vweird.f32 %v1844_v15 }
 0x22e   : > { %1251 = vrcp.f32 %v1846_v46  ;;  %v703_v37 = vand.u32 2147483647, %v512_v17  ;;  %v705_v0 = vand.u32 2147483648, %v512_v17  ;;  %v855_v49 = vand.u32 2147483648, %v1846_v46  ;;  %vm1917_vm2 = vmor %vm834_vm5, %vm835_vm7 }
 0x22f   : > { %1253 = vrcp.f32 %v512_v17  ;;  %v831_v27 = vsub.f32 1.0, %v830_v19  ;;  %vm699_vm6 = vweird.f32 %v512_v17  ;;  %v853_v43 = vand.u32 2147483647, %v1846_v46 }
 0x230   : > { %vm1872_vm9 = vcmp.eq.f32.partialorder %v703_v37, 8.507059e+37  ;;  %vm849_vm11 = vweird.f32 %v1846_v46  ;;  %v706_v16 = vor.u32 1.1754944e-38, %v705_v0  ;;  %v1884_v57 = vor.u32 1.1754944e-38, %v855_v49 }
 0x231   : > { %v832_v48 = vmul.f32 %v1844_v15, %v831_v27 }
 0x233   : > { %v833_v33 = vadd.f32 %v1844_v15, %v832_v48 }
 0x234   : > { %v1851_v29 = vpop.eup %1251  ;;  %v1855_v32 = vpop.f32.mrf.mxu2 }
 0x235   : > { %v1254_v52 = vpop.eup %1253  ;;  %v845_v30 = vmul.f32 %v1851_v29, %v1846_v46  ;;  %v1857_v34 = vpop.xlane.xlu0 %513  ;;  %vm850_vm13 = vweird.f32 %v1851_v29  ;;  %v837_v20 = vsel %vm1917_vm2, %v1844_v15, %v833_v33 }
 0x236   : > { %v695_v58 = vmul.f32 %v1254_v52, %v512_v17  ;;  %v1860_v39 = vpop.xlane.xlu2 %517  ;;  %v1862_v40 = vpop.xlane.xlu1 %533  ;;  %1255 = vrcp.f32 %v1857_v34  ;;  %vm700_vm8 = vweird.f32 %v1254_v52  ;;  %vm714_vm12 = vweird.f32 %v1857_v34 }
 0x237   : > { %1257 = vrcp.f32 %v1860_v39  ;;  %v846_v50 = vsub.f32 1.0, %v845_v30  ;;  %v748_v18 = vand.u32 2147483647, %v1860_v39  ;;  %vm701_vm14 = vmor %vm699_vm6, %vm700_vm8  ;;  %vm744_vm15 = vweird.f32 %v1860_v39 }
 0x238   : > { %v696_v6 = vsub.f32 1.0, %v695_v58  ;;  %1259 = vrcp.f32 %v1862_v40  ;;  %v750_v47 = vand.u32 2147483648, %v1860_v39  ;;  %v718_v60 = vand.u32 2147483647, %v1857_v34  ;;  %vm1944_vm6 = vmor %vm849_vm11, %vm850_vm13 }
 0x239   : > { %v847_v59 = vmul.f32 %v1851_v29, %v846_v50  ;;  %vm1898_vm1 = vcmp.eq.f32.partialorder %v748_v18, 8.507059e+37  ;;  %v720_v22 = vand.u32 2147483648, %v1857_v34  ;;  %v842_v19 = vsel %vm1877_vm10, %v841_v51, %v837_v20 }
 0x23a   : > { %v697_v53 = vmul.f32 %v1254_v52, %v696_v6  ;;  %v751_v7 = vor.u32 1.1754944e-38, %v750_v47  ;;  %vm1933_vm5 = vcmp.eq.f32.partialorder %v718_v60, 8.507059e+37  ;;  %v870_v45 = vand.u32 2147483648, %v1862_v40 }
 0x23b   : > { %v1926_v4 = vadd.f32 %v1851_v29, %v847_v59  ;;  %v721_v17 = vor.u32 1.1754944e-38, %v720_v22 }
 0x23c   : > { %v1256_v28 = vpop.eup %1255  ;;  %v698_v42 = vadd.f32 %v1254_v52, %v697_v53 }
 0x23d   : > { %v1258_v44 = vpop.eup %1257  ;;  %v710_v26 = vmul.f32 %v1256_v28, %v1857_v34  ;;  %v1895_v25 = vpop.xlane.xlu0 %519  ;;  %vm715_vm3 = vweird.f32 %v1256_v28  ;;  %v852_v37 = vsel %vm1944_vm6, %v1851_v29, %v1926_v4  ;;  %vm864_vm6 = vweird.f32 %v1862_v40 }
 0x23e   : > { %v702_v24 = vsel %vm701_vm14, %v1254_v52, %v698_v42  ;;  %v740_v56 = vmul.f32 %v1258_v44, %v1860_v39  ;;  %v1902_v23 = vpop.xlane.xlu2 %523  ;;  %1261 = vrcp.f32 %v1895_v25  ;;  %v1909_v63 = vpop.f32.mrf.mxu2  ;;  %vm745_vm4 = vweird.f32 %v1258_v44  ;;  %vm716_vm7 = vmor %vm714_vm12, %vm715_vm3 }
 0x23f   : > { %v707_v61 = vsel %vm1872_vm9, %v706_v16, %v702_v24  ;;  %v711_v54 = vsub.f32 1.0, %v710_v26  ;;  %1263 = vrcp.f32 %v1902_v23  ;;  %v1911_v1 = vpop.xlane.xlu1 %515  ;;  %v1928_v5 = vpop.eup %1259  ;;  %v793_v13 = vand.u32 2147483647, %v1902_v23  ;;  %vm746_vm8 = vmor %vm744_vm15, %vm745_vm4 }
 0x240   : > { %v708_v21 = vmul.f32 %v707_v61, %v1827_v9  ;;  %v741_v3 = vsub.f32 1.0, %v740_v56  ;;  %1265 = vrcp.f32 %v1911_v1  ;;  %v868_v52 = vand.u32 2147483647, %v1862_v40 }
 0x241   : > { %v712_v31 = vmul.f32 %v1256_v28, %v711_v54  ;;  %v1951_v58 = vmul.f32 %v1928_v5, %v1862_v40  ;;  %vm789_vm9 = vweird.f32 %v1902_v23  ;;  %v795_v49 = vand.u32 2147483648, %v1902_v23 }
 0x242   : > { %920 = vst.msk [vmem:[%s1823_s6 + $0x8] sm:$0xff] %vm283_vm0, %v708_v21  ;;  %v742_v8 = vmul.f32 %v1258_v44, %v741_v3  ;;  %vm1970_vm10 = vcmp.eq.f32.partialorder %v793_v13, 8.507059e+37  ;;  %vm729_vm11 = vweird.f32 %v1911_v1  ;;  %v733_v39 = vand.u32 2147483647, %v1911_v1 }
 0x243   : > { %v713_v15 = vadd.f32 %v1256_v28, %v712_v31  ;;  %vm1988_vm12 = vcmp.eq.f32.partialorder %v853_v43, 8.507059e+37  ;;  %v765_v56 = vand.u32 2147483648, %v1895_v25  ;;  %v763_v62 = vand.u32 2147483647, %v1895_v25 }
 0x244   : > { %v1262_v30 = vpop.eup %1261  ;;  %v743_v35 = vadd.f32 %v1258_v44, %v742_v8  ;;  %v796_v21 = vor.u32 1.1754944e-38, %v795_v49  ;;  %vm2008_vm4 = vcmp.eq.f32.partialorder %v733_v39, 8.507059e+37  ;;  %v861_v4 = vsub.f32 1.0, %v1951_v58 }
 0x245   : > { %v1264_v0 = vpop.eup %1263  ;;  %v717_v48 = vsel %vm716_vm7, %v1256_v28, %v713_v15  ;;  %v755_v34 = vmul.f32 %v1262_v30, %v1895_v25  ;;  %v1978_v18 = vpop.xlane.xlu0 %525  ;;  %v735_v28 = vand.u32 2147483648, %v1911_v1  ;;  %vm760_vm13 = vweird.f32 %v1262_v30 }
 0x246   : > { %v747_v6 = vsel %vm746_vm8, %v1258_v44, %v743_v35  ;;  %v722_v50 = vsel %vm1933_vm5, %v721_v17, %v717_v48  ;;  %v785_v51 = vmul.f32 %v1264_v0, %v1902_v23  ;;  %v1976_v38 = vpop.xlane.xlu2 %535  ;;  %v1266_v55 = vpop.eup %1265  ;;  %vm790_vm14 = vweird.f32 %v1264_v0 }
 0x247   : > { %v752_v16 = vsel %vm1898_vm1, %v751_v7, %v747_v6  ;;  %v723_v33 = vmul.f32 %v722_v50, %v1829_v36  ;;  %v756_v42 = vsub.f32 1.0, %v755_v34  ;;  %v661_v59 = vpop.f32.mrf.mxu2  ;;  %v1984_v44 = vpop.xlane.xlu1 %521  ;;  %v725_v24 = vmul.f32 %v1266_v55, %v1911_v1  ;;  %vm791_vm3 = vmor %vm789_vm9, %vm790_vm14 }
 0x248   : > { %v753_v26 = vmul.f32 %v752_v16, %v1833_v11  ;;  %v786_v60 = vsub.f32 1.0, %v785_v51  ;;  %1267 = vrcp.f32 %v1976_v38  ;;  %v843_v11 = vmul.f32 %v842_v19, %v661_v59 }
 0x249   : > { %921 = vst.msk [vmem:[%s1823_s6 + $0x10] sm:$0xff] %vm283_vm0, %v723_v33  ;;  %v757_v36 = vmul.f32 %v1262_v30, %v756_v42  ;;  %v726_v43 = vsub.f32 1.0, %v725_v24  ;;  %vm730_vm15 = vweird.f32 %v1266_v55  ;;  %vm759_vm1 = vweird.f32 %v1895_v25 }
 0x24a   : > { %923 = vst.msk [vmem:[%s1823_s6 + $0x20] sm:$0xff] %vm283_vm0, %v753_v26  ;;  %v787_v46 = vmul.f32 %v1264_v0, %v786_v60  ;;  %1269 = vrcp.f32 %v1984_v44  ;;  %vm761_vm2 = vmor %vm759_vm1, %vm760_vm13  ;;  %v766_v2 = vor.u32 1.1754944e-38, %v765_v56  ;;  %vm764_vm5 = vcmp.eq.f32.partialorder %v763_v62, 8.507059e+37 }
 0x24b   : > { %v758_v61 = vadd.f32 %v1262_v30, %v757_v36  ;;  %v727_v22 = vmul.f32 %v1266_v55, %v726_v43  ;;  %929 = vst.msk [vmem:[%s1823_s6 + $0x50] sm:$0xff] %vm283_vm0, %v843_v11  ;;  %1271 = vrcp.f32 %v1978_v18  ;;  %v736_v31 = vor.u32 1.1754944e-38, %v735_v28  ;;  %vm731_vm7 = vmor %vm729_vm11, %vm730_vm15 }
 0x24c   : > { %v788_v54 = vadd.f32 %v1264_v0, %v787_v46  ;;  %v778_v15 = vand.u32 2147483647, %v1984_v44  ;;  %v780_v17 = vand.u32 2147483648, %v1984_v44  ;;  %v810_v6 = vand.u32 2147483648, %v1978_v18 }
 0x24d   : > { %v762_v20 = vsel %vm761_vm2, %v1262_v30, %v758_v61  ;;  %v728_v7 = vadd.f32 %v1266_v55, %v727_v22  ;;  %v2041_v27 = vpop.xlane.xlu0 %537  ;;  %v885_v51 = vand.u32 2147483648, %v1976_v38  ;;  %vm774_vm8 = vweird.f32 %v1984_v44 }
 0x24e   : > { %v792_v25 = vsel %vm791_vm3, %v1264_v0, %v788_v54  ;;  %v767_v8 = vsel %vm764_vm5, %v766_v2, %v762_v20  ;;  %v2012_v9 = vpop.eup %1267  ;;  %vm2057_vm9 = vcmp.eq.f32.partialorder %v778_v15, 8.507059e+37  ;;  %vm2065_vm11 = vcmp.eq.f32.partialorder %v868_v52, 8.507059e+37 }
 0x24f   : > { %v797_v13 = vsel %vm1970_vm10, %v796_v21, %v792_v25  ;;  %v768_v23 = vmul.f32 %v767_v8, %v1835_v12  ;;  %v664_v19 = vpop.f32.mrf.mxu2  ;;  %v2022_v30 = vpop.xlane.xlu1 %527  ;;  %v732_v0 = vsel %vm731_vm7, %v1266_v55, %v728_v7  ;;  %v875_v48 = vmul.f32 %v2012_v9, %v1976_v38 }
 0x250   : > { %v798_v35 = vmul.f32 %v797_v13, %v1842_v14  ;;  %v857_v12 = vsel %vm1988_vm12, %v1884_v57, %v852_v37  ;;  %v1270_v1 = vpop.eup %1269  ;;  %v737_v49 = vsel %vm2008_vm4, %v736_v31, %v732_v0  ;;  %v808_v14 = vand.u32 2147483647, %v1978_v18 }
 0x251   : > { %924 = vst.msk [vmem:[%s1823_s6 + $0x28] sm:$0xff] %vm283_vm0, %v768_v23  ;;  %v858_v34 = vmul.f32 %v857_v12, %v664_v19  ;;  %1273 = vrcp.f32 %v2022_v30  ;;  %v1272_v29 = vpop.eup %1271  ;;  %v738_v57 = vmul.f32 %v737_v49, %v1831_v10  ;;  %v770_v37 = vmul.f32 %v1270_v1, %v1984_v44 }
 0x252   : > { %926 = vst.msk [vmem:[%s1823_s6 + $0x38] sm:$0xff] %vm283_vm0, %v798_v35  ;;  %v876_v50 = vsub.f32 1.0, %v875_v48  ;;  %v800_v53 = vmul.f32 %v1272_v29, %v1978_v18  ;;  %vm804_vm10 = vweird.f32 %v1978_v18  ;;  %1275 = vrcp.f32 %v2041_v27 }
 0x253   : > { %930 = vst.msk [vmem:[%s1823_s6 + $0x58] sm:$0xff] %vm283_vm0, %v858_v34  ;;  %v771_v58 = vsub.f32 1.0, %v770_v37  ;;  %v781_v55 = vor.u32 1.1754944e-38, %v780_v17  ;;  %vm2069_vm12 = vcmp.eq.f32.partialorder %v808_v14, 8.507059e+37  ;;  %v823_v28 = vand.u32 2147483647, %v2022_v30 }
 0x254   : > { %922 = vst.msk [vmem:[%s1823_s6 + $0x18] sm:$0xff] %vm283_vm0, %v738_v57  ;;  %v801_v16 = vsub.f32 1.0, %v800_v53  ;;  %vm775_vm13 = vweird.f32 %v1270_v1  ;;  %v811_v59 = vor.u32 1.1754944e-38, %v810_v6  ;;  %v862_v47 = vmul.f32 %v1928_v5, %v861_v4 }
 0x255   : > { %v772_v42 = vmul.f32 %v1270_v1, %v771_v58  ;;  %v877_v60 = vmul.f32 %v2012_v9, %v876_v50  ;;  %vm879_vm14 = vweird.f32 %v1976_v38  ;;  %vm805_vm15 = vweird.f32 %v1272_v29  ;;  %vm776_vm3 = vmor %vm774_vm8, %vm775_vm13 }
 0x256   : > { %v802_v52 = vmul.f32 %v1272_v29, %v801_v16  ;;  %vm819_vm1 = vweird.f32 %v2022_v30  ;;  %v825_v46 = vand.u32 2147483648, %v2022_v30  ;;  %vm865_vm2 = vweird.f32 %v1928_v5  ;;  %vm806_vm5 = vmor %vm804_vm10, %vm805_vm15 }
 0x257   : > { %v1274_v26 = vpop.eup %1273  ;;  %v667_v24 = vpop.f32.mrf.mxu2  ;;  %v773_v36 = vadd.f32 %v1270_v1, %v772_v42  ;;  %vm2086_vm4 = vcmp.eq.f32.partialorder %v823_v28, 8.507059e+37  ;;  %v863_v61 = vadd.f32 %v1928_v5, %v862_v47  ;;  %v898_v44 = vand.u32 2147483647, %v2041_v27  ;;  %vm866_vm8 = vmor %vm864_vm6, %vm865_vm2 }
 0x258   : > { %v2078_v56 = vpop.xlane.xlu1 %539  ;;  %v815_v62 = vmul.f32 %v1274_v26, %v2022_v30  ;;  %v803_v43 = vadd.f32 %v1272_v29, %v802_v52  ;;  %v1276_v54 = vpop.eup %1275  ;;  %v871_v21 = vor.u32 1.1754944e-38, %v870_v45  ;;  %vm820_vm7 = vweird.f32 %v1274_v26 }
 0x259   : > { %1277 = vrcp.f32 %v2078_v56  ;;  %v777_v22 = vsel %vm776_vm3, %v1270_v1, %v773_v36  ;;  %v890_v25 = vmul.f32 %v1276_v54, %v2041_v27  ;;  %v867_v45 = vsel %vm866_vm8, %v1928_v5, %v863_v61  ;;  %vm821_vm6 = vmor %vm819_vm1, %vm820_vm7  ;;  %v673_v1 = vpop.f32.mrf.mxu3 }
 0x25a   : > { %v816_v2 = vsub.f32 1.0, %v815_v62  ;;  %v782_v3 = vsel %vm2057_vm9, %v781_v55, %v777_v22  ;;  %v807_v20 = vsel %vm806_vm5, %v1272_v29, %v803_v43  ;;  %v826_v13 = vor.u32 1.1754944e-38, %v825_v46 }
 0x25b   : > { %v783_v18 = vmul.f32 %v782_v3, %v1837_v41  ;;  %v812_v7 = vsel %vm2069_vm12, %v811_v59, %v807_v20  ;;  %v891_v23 = vsub.f32 1.0, %v890_v25  ;;  %v872_v15 = vsel %vm2065_vm11, %v871_v21, %v867_v45 }
 0x25c   : > { %v817_v31 = vmul.f32 %v1274_v26, %v816_v2  ;;  %v813_v8 = vmul.f32 %v812_v7, %v1855_v32  ;;  %v900_v17 = vand.u32 2147483648, %v2041_v27  ;;  %v873_v41 = vmul.f32 %v872_v15, %v667_v24 }
 0x25d   : > { %925 = vst.msk [vmem:[%s1823_s6 + $0x30] sm:$0xff] %vm283_vm0, %v783_v18  ;;  %v878_v19 = vadd.f32 %v2012_v9, %v877_v60  ;;  %v892_v32 = vmul.f32 %v1276_v54, %v891_v23  ;;  %vm895_vm9 = vweird.f32 %v1276_v54  ;;  %vm880_vm10 = vweird.f32 %v2012_v9 }
 0x25e   : > { %v818_v40 = vadd.f32 %v1274_v26, %v817_v31  ;;  %927 = vst.msk [vmem:[%s1823_s6 + $0x40] sm:$0xff] %vm283_vm0, %v813_v8  ;;  %v883_v5 = vand.u32 2147483647, %v1976_v38  ;;  %vm894_vm11 = vweird.f32 %v2041_v27  ;;  %vm881_vm12 = vmor %vm879_vm14, %vm880_vm10  ;;  %v886_v30 = vor.u32 1.1754944e-38, %v885_v51 }
 0x25f   : > { %v1278_v35 = vpop.eup %1277  ;;  %931 = vst.msk [vmem:[%s1823_s6 + $0x60] sm:$0xff] %vm283_vm0, %v873_v41  ;;  %v670_v12 = vpop.f32.mrf.mxu2  ;;  %v893_v14 = vadd.f32 %v1276_v54, %v892_v32  ;;  %v882_v34 = vsel %vm881_vm12, %v2012_v9, %v878_v19  ;;  %vm896_vm15 = vmor %vm894_vm11, %vm895_vm9  ;;  %v901_v29 = vor.u32 1.1754944e-38, %v900_v17  ;;  %vm899_vm14 = vcmp.eq.f32.partialorder %v898_v44, 8.507059e+37 }
 0x260   : > { %v822_v0 = vsel %vm821_vm6, %v1274_v26, %v818_v40  ;;  %v905_v48 = vmul.f32 %v1278_v35, %v2078_v56  ;;  %vm884_vm13 = vcmp.eq.f32.partialorder %v883_v5, 8.507059e+37  ;;  %v915_v37 = vand.u32 2147483648, %v2078_v56 }
 0x261   : > { %v827_v49 = vsel %vm2086_vm4, %v826_v13, %v822_v0  ;;  %v887_v38 = vsel %vm884_vm13, %v886_v30, %v882_v34  ;;  %v897_v57 = vsel %vm896_vm15, %v1276_v54, %v893_v14  ;;  %vm910_vm1 = vweird.f32 %v1278_v35  ;;  %v676_v39 = vpop.f32.mrf.mxu3 }
 0x262   : > { %v828_v27 = vmul.f32 %v827_v49, %v1909_v63  ;;  %v906_v4 = vsub.f32 1.0, %v905_v48  ;;  %v888_v6 = vmul.f32 %v887_v38, %v670_v12  ;;  %v902_v63 = vsel %vm899_vm14, %v901_v29, %v897_v57 }
 0x263   : > { %v913_v50 = vand.u32 2147483647, %v2078_v56  ;;  %v903_v51 = vmul.f32 %v902_v63, %v673_v1  ;;  %vm909_vm2 = vweird.f32 %v2078_v56  ;;  %v916_v58 = vor.u32 1.1754944e-38, %v915_v37 }
 0x264   : > { %928 = vst.msk [vmem:[%s1823_s6 + $0x48] sm:$0xff] %vm283_vm0, %v828_v27  ;;  %v907_v9 = vmul.f32 %v1278_v35, %v906_v4  ;;  %vm911_vm3 = vmor %vm909_vm2, %vm910_vm1 }
 0x265   : > { %932 = vst.msk [vmem:[%s1823_s6 + $0x68] sm:$0xff] %vm283_vm0, %v888_v6  ;;  %vm914_vm4 = vcmp.eq.f32.partialorder %v913_v50, 8.507059e+37 }
 0x266   : > { %v908_v53 = vadd.f32 %v1278_v35, %v907_v9  ;;  %933 = vst.msk [vmem:[%s1823_s6 + $0x70] sm:$0xff] %vm283_vm0, %v903_v51 }
 0x268   : > { %v912_v10 = vsel %vm911_vm3, %v1278_v35, %v908_v53 }
 0x269   : > { %v917_v55 = vsel %vm914_vm4, %v916_v58, %v912_v10 }
 0x26a   : > { %v918_v16 = vmul.f32 %v917_v55, %v676_v39 }
 0x26c   : > { %934 = vst.msk [vmem:[%s1823_s6 + $0x78] sm:$0xff] %vm283_vm0, %v918_v16 }
 0x26d   : > { %1396 = shalt.err (!%p1393_p10)
}
 0x26e   : > { %s1445_s20 = smov 128   ;;  %s1446_s21 = smov 8  }
 0x26f   : > { %1153 = dma.vmem_to_hbm [thread:$0]  (%p1544_p3), %s949_s8, 2048, %s951_s9, %s936_s24, %s1445_s20, %s1445_s20, %s1446_s21  }
 0x270 PF: > { %s965_s26 = sand.u32 1, %s1427_s15   ;;  %p2217_p12 = scmp.ge.s32.totalorder %s1439_s18, 2 }
 0x271   : > { %s966_s6 = scalar_lea.sflag [#allocation4], %s965_s26 }
 0x272   : > { %p1167_p13 = pnand %p2217_p12, %p1507_p6 }
 0x274   : > { %p1168_p0 = pneg %p1167_p13 }
 0x276   : > { %1422 = dma.done.wait (%p1168_p0), %s966_s6, 2048  }
 0x277   : > { %1424 = vsyncadd (%p1168_p0), %s966_s6, 4294965248  ;;  %p18_p5 = scmp.ge.s32.totalorder %s1534_s10, 4   ;;  %s2218_s15 = smov %s1431_s16 }
 0x278   : > { %s2219_s16 = smov %s1435_s17  ;;  %s2220_s17 = smov %s1550_s14 }
 0x279   : > { %s2221_s18 = smov %s1534_s10  ;;  %20 = sbr.rel (!%p18_p5) target bundleno = 6 (0x6), region = 89 }
 0x27e   :  { %972 = vsyncpa [#allocation3], 1 }
 0x27f   :  { %974 = vsyncpa [#allocation3 + $0x1], 1 }
 0x280   :  { %975 = vsyncpa [#allocation6], 1 }
 0x281   :  { %976 = vsyncpa [#allocation4], 1 }
 0x282   :  { %978 = vsyncpa [#allocation4 + $0x1], 1 }

</bundles_post_ra>
